<compile_context>
chip_gen: v6e
topology: v6e:2x2x1
jax: 0.10.0
libtpu: 0.0.40
codegen_flags: <defaults>
</compile_context>

<pallas_src>
import jax
import jax.numpy as jnp
from jax.experimental import pallas as pl
from jax.experimental.pallas import tpu as pltpu


def _gcn_layer_kernel(adj_ref, x_ref, w_ref, b_ref, out_ref, acc_ref):
    """One (row-tile, k-tile) step of: leaky_relu(adj @ (x @ W) + b, 0.25)."""
    k = pl.program_id(1)

    @pl.when(k == 0)
    def _init():
        acc_ref[...] = jnp.zeros_like(acc_ref)

    # support = x_k @ W      (bk, D) @ (D, H)  -> (bk, H)
    support = jnp.dot(x_ref[...], w_ref[...], preferred_element_type=jnp.float32)
    # partial output = adj_ik @ support        (bn, bk) @ (bk, H) -> (bn, H)
    acc_ref[...] += jnp.dot(adj_ref[...], support,
                            preferred_element_type=jnp.float32)

    @pl.when(k == pl.num_programs(1) - 1)
    def _finish():
        h = acc_ref[...] + b_ref[...]
        out_ref[...] = jnp.where(h >= 0.0, h, 0.25 * h).astype(out_ref.dtype)


def _round_up(a, m):
    return (a + m - 1) // m * m


def gcn_layer(adj, x, w, b, *, target_block=512):
    """leaky_relu(adj @ (x @ w) + b, 0.25) with adj dense (N, N)."""
    N, D = x.shape
    H = w.shape[1]
    b = b.reshape(1, H).astype(jnp.float32)
    adj = adj.astype(jnp.float32)
    x = x.astype(jnp.float32)
    w = w.astype(jnp.float32)

    if N <= target_block:
        # Small graph: keep the whole reduction in one block but still split the
        # output rows into 2 parallel blocks so both v7x TensorCores get work.
        Np = _round_up(N, 16)
        bn = Np // 2          # divisible by 8 (sublane constraint)
        bk = Np               # full padded dim (lane constraint satisfied)
    else:
        bn = bk = target_block  # 512: divisible by (8, 128)
        Np = _round_up(N, target_block)

    if Np != N:
        adj = jnp.pad(adj, ((0, Np - N), (0, Np - N)))
        x = jnp.pad(x, ((0, Np - N), (0, 0)))

    grid = (Np // bn, Np // bk)  # (parallel rows, reduction over adj columns)

    out = pl.pallas_call(
        _gcn_layer_kernel,
        out_shape=jax.ShapeDtypeStruct((Np, H), jnp.float32),
        grid=grid,
        in_specs=[
            pl.BlockSpec((bn, bk), lambda i, k: (i, k)),   # adj tile
            pl.BlockSpec((bk, D), lambda i, k: (k, 0)),    # x (rows of support)
            pl.BlockSpec((D, H), lambda i, k: (0, 0)),     # W  (replicated)
            pl.BlockSpec((1, H), lambda i, k: (0, 0)),     # bias (replicated)
        ],
        out_specs=pl.BlockSpec((bn, H), lambda i, k: (i, 0)),
        scratch_shapes=[pltpu.VMEM((bn, H), jnp.float32)],
        compiler_params=pltpu.CompilerParams(
            dimension_semantics=("parallel", "arbitrary")),
    )(adj, x, w, b)

    return out[:N] if Np != N else out


def gcn_e_forward(x, adj, params, *, target_block=512):
    """GCN_E.forward: three GraphConvolution layers + LeakyReLU(0.25)."""
    (w1, b1), (w2, b2), (w3, b3) = params
    # TODO(synk): F.dropout is identity in eval mode; training-mode dropout not implemented.
    h = gcn_layer(adj, x, w1, b1, target_block=target_block)
    h = gcn_layer(adj, h, w2, b2, target_block=target_block)
    h = gcn_layer(adj, h, w3, b3, target_block=target_block)
    return h


def _reference_forward(x, adj, params):
    """Plain-JAX transcription of the PyTorch forward (eval mode)."""
    h = x
    for w, b in params:
        h = adj @ (h @ w) + b.reshape(1, -1)
        h = jnp.where(h >= 0.0, h, 0.25 * h)
    return h


def _xavier_normal(key, shape):
    fan_in, fan_out = shape
    std = (2.0 / (fan_in + fan_out)) ** 0.5
    return std * jax.random.normal(key, shape, dtype=jnp.float32)


if __name__ == "__main__":
    num_nodes = 16
    in_dim = 8
    hgcn_dim = (32, 32, 16)

    key = jax.random.PRNGKey(0)
    k_x, k_adj, k_w1, k_w2, k_w3 = jax.random.split(key, 5)

    # Node features.
    x = jax.random.normal(k_x, (num_nodes, in_dim), dtype=jnp.float32)

    # Dense, row-normalized adjacency with self loops (stands in for the
    # sparse adj of torch.sparse.mm).
    a = (jax.random.uniform(k_adj, (num_nodes, num_nodes)) > 0.6).astype(jnp.float32)
    a = a + jnp.eye(num_nodes, dtype=jnp.float32)
    adj = a / a.sum(axis=1, keepdims=True)

    # xavier_normal_ weights, zero biases (matches GraphConvolution init).
    dims = (in_dim,) + hgcn_dim
    wkeys = (k_w1, k_w2, k_w3)
    params = []
    for l in range(3):
        w = _xavier_normal(wkeys[l], (dims[l], dims[l + 1]))
        b = jnp.zeros((1, dims[l + 1]), dtype=jnp.float32)
        params.append((w, b))

    out = gcn_e_forward(x, adj, params)
    out = jax.block_until_ready(out)

    ref = _reference_forward(x, adj, params)
    assert out.shape == (num_nodes, hgcn_dim[-1])
    assert jnp.allclose(out, ref, atol=1e-4, rtol=1e-4), "mismatch vs reference"

    print("KERNEL_OK")
</pallas_src>

<mosaic_0001>
module attributes {stable_mosaic.version = 11 : i64} {
  func.func @_gcn_layer_kernel(%arg0: i32, %arg1: i32, %arg2: memref<8x16xf32, #tpu.memory_space<vmem>>, %arg3: memref<16x8xf32, #tpu.memory_space<vmem>>, %arg4: memref<8x32xf32, #tpu.memory_space<vmem>>, %arg5: memref<1x32xf32, #tpu.memory_space<vmem>>, %arg6: memref<8x32xf32, #tpu.memory_space<vmem>>, %arg7: memref<8x32xf32, #tpu.memory_space<vmem>>) attributes {dimension_semantics = [#tpu.dimension_semantics<parallel>, #tpu.dimension_semantics<arbitrary>], iteration_bounds = array<i64: 2, 1>, scalar_prefetch = 0 : i64, scratch_operands = 1 : i64, tpu.core_type = #tpu.core_type<tc>, window_params = [{transform_indices = @transform_0, window_bounds = array<i64: 8, 16>}, {transform_indices = @transform_1, window_bounds = array<i64: 16, 8>}, {pipeline_mode = #tpu.pipeline_mode<synchronous>, transform_indices = @transform_2, window_bounds = array<i64: 8, 32>}, {pipeline_mode = #tpu.pipeline_mode<synchronous>, transform_indices = @transform_3, window_bounds = array<i64: 1, 32>}, {transform_indices = @transform_4, window_bounds = array<i64: 8, 32>}]} {
    %c0_i32 = arith.constant 0 : i32
    %0 = arith.cmpi eq, %arg1, %c0_i32 : i32
    %1 = arith.extui %0 : i1 to i32
    %c0_i32_0 = arith.constant 0 : i32
    %2 = arith.cmpi ne, %1, %c0_i32_0 : i32
    scf.if %2 {
      %cst_13 = arith.constant 0.000000e+00 : f32
      %14 = vector.broadcast %cst_13 : f32 to vector<8x32xf32>
      %c0_14 = arith.constant 0 : index
      %c0_15 = arith.constant 0 : index
      %15 = vector.load %arg7[%c0_14, %c0_15] : memref<8x32xf32, #tpu.memory_space<vmem>>, vector<8x32xf32>
      tpu.vector_store %arg7[%c0_14, %c0_15], %14 {strides = array<i32>} : memref<8x32xf32, #tpu.memory_space<vmem>>, vector<8x32xf32>,
    } else {
    }
    %c0 = arith.constant 0 : index
    %c0_1 = arith.constant 0 : index
    %3 = vector.load %arg3[%c0, %c0_1] : memref<16x8xf32, #tpu.memory_space<vmem>>, vector<16x8xf32>
    %c0_2 = arith.constant 0 : index
    %c0_3 = arith.constant 0 : index
    %4 = vector.load %arg4[%c0_2, %c0_3] : memref<8x32xf32, #tpu.memory_space<vmem>>, vector<8x32xf32>
    %cst = arith.constant dense<0.000000e+00> : vector<16x32xf32>
    %5 = tpu.matmul %3, %4, %cst {dimension_numbers = #tpu.dot_dimension_numbers<[1], [0], [0], [1], [0, 0, 1, 1], [], []>} : vector<16x8xf32>, vector<8x32xf32>, vector<16x32xf32> -> vector<16x32xf32>
    %c0_4 = arith.constant 0 : index
    %c0_5 = arith.constant 0 : index
    %6 = vector.load %arg7[%c0_4, %c0_5] : memref<8x32xf32, #tpu.memory_space<vmem>>, vector<8x32xf32>
    %c0_6 = arith.constant 0 : index
    %c0_7 = arith.constant 0 : index
    %7 = vector.load %arg2[%c0_6, %c0_7] : memref<8x16xf32, #tpu.memory_space<vmem>>, vector<8x16xf32>
    %cst_8 = arith.constant dense<0.000000e+00> : vector<8x32xf32>
    %8 = tpu.matmul %7, %5, %cst_8 {dimension_numbers = #tpu.dot_dimension_numbers<[1], [0], [0], [1], [0, 0, 1, 1], [], []>} : vector<8x16xf32>, vector<16x32xf32>, vector<8x32xf32> -> vector<8x32xf32>
    %9 = arith.addf %6, %8 : vector<8x32xf32>
    %c0_9 = arith.constant 0 : index
    %c0_10 = arith.constant 0 : index
    %10 = vector.load %arg7[%c0_9, %c0_10] : memref<8x32xf32, #tpu.memory_space<vmem>>, vector<8x32xf32>
    tpu.vector_store %arg7[%c0_9, %c0_10], %9 {strides = array<i32>} : memref<8x32xf32, #tpu.memory_space<vmem>>, vector<8x32xf32>,
    %c0_i32_11 = arith.constant 0 : i32
    %11 = arith.cmpi eq, %arg1, %c0_i32_11 : i32
    %12 = arith.extui %11 : i1 to i32
    %c0_i32_12 = arith.constant 0 : i32
    %13 = arith.cmpi ne, %12, %c0_i32_12 : i32
    scf.if %13 {
      %c0_13 = arith.constant 0 : index
      %c0_14 = arith.constant 0 : index
      %14 = vector.load %arg7[%c0_13, %c0_14] : memref<8x32xf32, #tpu.memory_space<vmem>>, vector<8x32xf32>
      %c0_15 = arith.constant 0 : index
      %c0_16 = arith.constant 0 : index
      %15 = vector.load %arg5[%c0_15, %c0_16] : memref<1x32xf32, #tpu.memory_space<vmem>>, vector<1x32xf32>
      %16 = vector.broadcast %15 : vector<1x32xf32> to vector<8x32xf32>
      %17 = arith.addf %14, %16 : vector<8x32xf32>
      %cst_17 = arith.constant 0.000000e+00 : f32
      %18 = vector.broadcast %cst_17 : f32 to vector<8x32xf32>
      %19 = arith.cmpf oge, %17, %18 : vector<8x32xf32>
      %cst_18 = arith.constant 2.500000e-01 : f32
      %20 = vector.broadcast %cst_18 : f32 to vector<8x32xf32>
      %21 = arith.mulf %20, %17 : vector<8x32xf32>
      %22 = arith.select %19, %17, %21 : vector<8x32xi1>, vector<8x32xf32>
      %c0_19 = arith.constant 0 : index
      %c0_20 = arith.constant 0 : index
      %23 = vector.load %arg6[%c0_19, %c0_20] : memref<8x32xf32, #tpu.memory_space<vmem>>, vector<8x32xf32>
      tpu.vector_store %arg6[%c0_19, %c0_20], %22 {strides = array<i32>} : memref<8x32xf32, #tpu.memory_space<vmem>>, vector<8x32xf32>,
    } else {
    }
    return
  }
  func.func @transform_0(%arg0: i32, %arg1: i32) -> (i32, i32) {
    %c0_i32 = arith.constant 0 : i32
    return %arg0, %arg1 : i32, i32
  }
  func.func @transform_1(%arg0: i32, %arg1: i32) -> (i32, i32) {
    %c0_i32 = arith.constant 0 : i32
    %c0_i32_0 = arith.constant 0 : i32
    return %arg1, %c0_i32 : i32, i32
  }
  func.func @transform_2(%arg0: i32, %arg1: i32) -> (i32, i32) {
    %c0_i32 = arith.constant 0 : i32
    %c0_i32_0 = arith.constant 0 : i32
    %c0_i32_1 = arith.constant 0 : i32
    return %c0_i32, %c0_i32_0 : i32, i32
  }
  func.func @transform_3(%arg0: i32, %arg1: i32) -> (i32, i32) {
    %c0_i32 = arith.constant 0 : i32
    %c0_i32_0 = arith.constant 0 : i32
    %c0_i32_1 = arith.constant 0 : i32
    return %c0_i32, %c0_i32_0 : i32, i32
  }
  func.func @transform_4(%arg0: i32, %arg1: i32) -> (i32, i32) {
    %c0_i32 = arith.constant 0 : i32
    %c0_i32_0 = arith.constant 0 : i32
    return %arg0, %c0_i32 : i32, i32
  }
}

</mosaic_0001>

<bundles_post_ra>
// kernel: tpu_custom_call.1
= control target key start
LH: loop header
LB: loop body
LE: loop exit
PB: predicated region body
PF: predicated region fallthrough
CT: control target
= control target key end

     0   :  { %9 = vsyncpa [#allocation4], 0  ;;  %s840_s0 = inlined_call_operand.vmem [shape: f32[16,16], index: 0, kind: input, shape index: {}]   ;;  %s841_s1 = inlined_call_operand.vmem [shape: f32[16,8], index: 1, kind: input, shape index: {}]   ;;  %s842_s2 = inlined_call_operand.vmem [shape: f32[8,32], index: 2, kind: input, shape index: {}]   ;;  %s843_s3 = inlined_call_operand.vmem [shape: f32[1,32], index: 3, kind: input, shape index: {}]   ;;  %s844_s4 = inlined_call_operand.hbm [shape: f32[16,32], index: 4, kind: output, shape index: {}]  }
   0x1   :  { %11 = vsyncpa [#allocation4 + $0x1], 0  ;;  %s720_s15 = smov 0   ;;  %s722_s16 = smov 0  }
   0x2   :  { %s724_s17 = smov 0   ;;  %s726_s18 = smov 0  }
   0x3   :  { %s728_s19 = smov 0   ;;  %s730_s20 = smov 0  }
   0x4 LB: > { %s523_s21 = sadd.s32 4294967295, %s690_s20   ;;  %s524_s22 = sadd.s32 4294967294, %s690_s20   ;;  %s690_s20 = sphi %s730_s20, %s17_s20   ;;  %s686_s19 = sphi %s728_s19, %s851_s19   ;;  %s682_s18 = sphi %s726_s18, %s850_s18   ;;  %s678_s17 = sphi %s724_s17, %s849_s17   ;;  %s674_s16 = sphi %s722_s16, %s848_s16   ;;  %s670_s15 = sphi %s720_s15, %s847_s15  }
   0x5   : > { %s29_s23 = sadd.s32 1, %s686_s19  ;;  %s132_s24 = sadd.s32 1, %s678_s17 }
   0x6   : > { %p31_p0 = scmp.ge.s32.totalorder %s29_s23, 2  ;;  %p142_p1 = scmp.ne.s32.totalorder %s678_s17, %s674_s16 }
   0x7   : > { %p143_p2 = scmp.eq.s32.totalorder %s523_s21, 1  ;;  %p148_p3 = scmp.ne.s32.totalorder %s674_s16, %s670_s15 }
   0x8   : > { %s853_s23 = smov (%p31_p0, %s29_s23), 0  ;;  %p149_p5 = scmp.eq.s32.totalorder %s524_s22, 1 }
   0x9   : > { %p760_p4 = por %p143_p2, %p142_p1  ;;  %s129_s26 = ssub.s32 %s686_s19, %s853_s23 }
   0xa   : > { %p528_p6 = scmp.ge.s32.totalorder %s690_s20, 1  ;;  %p130_p7 = scmp.eq.s32.totalorder %s129_s26, 0 }
   0xb   : > { %p767_p8 = por %p149_p5, %p148_p3  ;;  %p192_p9 = scmp.lt.s32.totalorder %s690_s20, 3 }
   0xc   : > { %s773_s28 = scalar_select %p130_p7, %s678_s17, %s132_s24  }
   0xd   : > { %p193_p10 = pnand %p528_p6, %p192_p9 }
   0xe   : > { %p225_p11 = scmp.lt.s32.totalorder (!%p193_p10), %s682_s18, 1  ;;  %s222_s14 = sand.u32 (!%p193_p10), 1, %s674_s16  }
   0xf   : > { %196 = sbr.rel (%p193_p10) target bundleno = 440 (0x1b8), region = 36  ;;  %s529_s21 = sshll.u32 (!%p193_p10), %s222_s14, 3 }
  0x10   : > { %s536_s26 = sshll.u32 (!%p193_p10), %s682_s18, 7  ;;  %s224_s29 = scalar_lea.vmem (!%p193_p10), [#allocation3], %s529_s21 }
  0x11   : > { %s438_s30 = sshll.u32 (!%p193_p10), %s224_s29, 4  ;;  %s799_s7 = scalar_lea.hbm (!%p193_p10), %s844_s4, %s536_s26  ;;  %s439_s30 = int_to_ptr.vmem [resolvable:$true] %s438_s30 }
  0x12   : > { %s425_s8 = scalar_lea.sflag (!%p193_p10), [#allocation4], %s222_s14 }
  0x14   : > { %v246_v0 = vld [vmem:[%s842_s2] sm:$0xff]  ;;  %vm247_vm0 = vcmask 64512   ;;  %v245_v2 = vld [vmem:[%s841_s1 + $0x8] sm:$0xff]  ;;  %v692_v3 = vmov 0.0   ;;  %vm693_vm1 = vmmov 0   ;;  %vm242_vm2 = vcmask 261120  }
  0x15   : > { %v244_v1 = vld [vmem:[%s841_s1] sm:$0xff]  ;;  %545 = vmatprep.subr.mxu0 %v246_v0  ;;  %550 = vmatprep.subr.mxu1 %v692_v3  ;;  %243 = vst.msk [vmem:[#allocation2] sm:$0xff] %vm242_vm2, %v692_v3  ;;  %s226_s9 = scalar_select %p225_p11, %s682_s18, 1  ;;  %vm331_vm3 = vcmask 130048  }
  0x16   : > { %547 = vmatprep.mubr.msk.f32.mxu0 %vm247_vm0, %v244_v1  ;;  %546 = vmatpush3.msra.mxu0 %v246_v0  ;;  %v534_v11 = vld [vmem:[%s843_s3] ss:$0 sm:$0xff]  ;;  %s694_s18 = smov [#allocation3]  }
  0x17   : > { %548 = vmatmul.mubr.msk.f32.vlgmr.msra.gmra.mxu0 %vm247_vm0, %v245_v2  ;;  %554 = vmatprep.mubr.msk.f32.mxu1 %vm693_vm1, %v692_v3  ;;  %s530_s10 = sshll.u32 %s226_s9, 3  ;;  %s614_s9 = scalar_lea.vmem %s439_s30, 128 }
  0x18   : > { %s231_s13 = scalar_lea.vmem %s840_s0, %s530_s10  ;;  %p615_p12 = scmp.ne.s32.totalorder %s439_s30, %s614_s9 }
  0x19   : > { %v330_v5 = vld [vmem:[%s231_s13] sm:$0xff]  ;;  %s618_s10 = sshll.u32 %s694_s18, 4  ;;  %s619_s10 = int_to_ptr.vmem [resolvable:$false] %s618_s10 }
  0x1a   : > { %p616_p13 = pnand %p615_p12, %p760_p4  ;;  %s620_s11 = scalar_lea.vmem %s619_s10, 256 }
  0x1b   : > { %p621_p1 = scmp.lt.s32.totalorder %s439_s30, %s619_s10  ;;  %p622_p2 = scmp.lt.s32.totalorder %s620_s11, %s614_s9 }
  0x1c   : > { %v329_v7 = vld [vmem:[#allocation2] sm:$0xff]  ;;  %p617_p0 = pneg %p616_p13 }
  0x1d   : > { %p623_p3 = por %p622_p2, %p621_p1 }
  0x1f   : > { %p624_p5 = pnand %p623_p3, %p617_p0 }
  0xd7   : > { %v549_v4 = vpop.f32.mrf.mxu0 }
  0xd8   : > { %551 = vmatpush3.msra.mxu1 %v549_v4 }
  0xd9   : > { %v320_v6 = vpop.f32.mrf.mxu0  ;;  %552 = vmatprep.subr.mxu1 %v692_v3 }
  0xda   : > { %553 = vmatpush3.msra.mxu1 %v320_v6 }
  0xdb   : > { %555 = vmatmul.mubr.msk.f32.vlgmr.msra.gmra.mxu1 %vm331_vm3, %v330_v5 }
 0x19b   : > { %v401_v8 = vpop.f32.mrf.mxu1 }
 0x19c   : > { %v405_v9 = vadd.f32 %v401_v8, %v329_v7 }
 0x19d   : > { %v556_v10 = vpop.f32.mrf.mxu1 }
 0x19e   : > { %407 = vst.msk [vmem:[#allocation2] sm:$0xff] %vm242_vm2, %v405_v9 }
 0x1a5   : > { %v411_v12 = vld [vmem:[#allocation2] sm:$0xff] }
 0x1a6   : > { %v419_v13 = vadd.f32 %v534_v11, %v411_v12 }
 0x1a8   : > { %vm420_vm4 = vcmp.ge.f32.partialorder %v419_v13, 0.0  ;;  %v421_v14 = vmul.f32 0.25, %v419_v13 }
 0x1aa   : > { %v422_v15 = vsel %vm420_vm4, %v419_v13, %v421_v14 }
 0x1ab   : > { %423 = vst.msk [vmem:[%s224_s29] sm:$0xff] %vm242_vm2, %v422_v15 }
 0x1ac   : > { %627 = shalt.err (!%p624_p5)
}
 0x1ad   : > { %s628_s12 = scalar_lea.hbm %s799_s7, 128  ;;  %s632_s21 = scalar_lea.hbm %s844_s4, 256 }
 0x1ae   : > { %p629_p6 = scmp.ne.s32.totalorder %s799_s7, %s628_s12  ;;  %p633_p10 = scmp.lt.s32.totalorder %s799_s7, %s844_s4 }
 0x1af   : > { %p634_p11 = scmp.lt.s32.totalorder %s632_s21, %s628_s12 }
 0x1b0   : > { %p630_p7 = pnand %p629_p6, %p760_p4 }
 0x1b1   : > { %p635_p12 = por %p634_p11, %p633_p10 }
 0x1b2   : > { %p631_p9 = pneg %p630_p7 }
 0x1b4   : > { %p636_p13 = pnand %p635_p12, %p631_p9 }
 0x1b6   : > { %639 = shalt.err (!%p636_p13)
}
 0x1b7   : > { %557 = dma.vmem_to_hbm [thread:$0]  (%p760_p4), %s439_s30, 128, %s799_s7, %s425_s8  }
 0x1b8 PF: > { %p563_p0 = scmp.ge.s32.totalorder %s690_s20, 2  ;;  %s450_s26 = sand.u32 1, %s670_s15  }
 0x1b9   : > { %s451_s29 = scalar_lea.sflag [#allocation4], %s450_s26 }
 0x1ba   : > { %p560_p1 = pnand %p563_p0, %p767_p8 }
 0x1bc   : > { %p561_p2 = pneg %p560_p1 }
 0x1be   : > { %665 = dma.done.wait (%p561_p2), %s451_s29, 128  }
 0x1bf   : > { %667 = vsyncadd (%p561_p2), %s451_s29, 4294967168  ;;  %s17_s20 = sadd.s32 1, %s690_s20   ;;  %s847_s15 = smov %s674_s16 }
 0x1c0   : > { %p14_p3 = scmp.ge.s32.totalorder %s17_s20, 4   ;;  %s848_s16 = smov %s678_s17 }
 0x1c1   : > { %s849_s17 = smov %s773_s28  ;;  %s850_s18 = smov %s686_s19 }
 0x1c2   : > { %s851_s19 = smov %s853_s23  ;;  %16 = sbr.rel (!%p14_p3) target bundleno = 4 (0x4), region = 82 }
 0x1c7   :  { %456 = vsyncpa [#allocation4], 1 }
 0x1c8   :  { %458 = vsyncpa [#allocation4 + $0x1], 1 }

</bundles_post_ra>
